<compile_context>
chip_gen: v7x
topology: tpu7x:2x2x1
jax: 0.10.0
libtpu: 0.0.40
codegen_flags: <defaults>
</compile_context>

<pallas_src>
import jax
import jax.numpy as jnp
import numpy as np
from jax import lax
from jax.experimental import pallas as pl
from jax.experimental.pallas import tpu as pltpu

EPS = 1e-5
C_IN, C1, C2, C3 = 27, 32, 48, 64
ROW_TILE_TARGET = 2048       # rows per stats-pass block
FINAL_ROWS_TARGET = 16384    # row cap per fused final-pass block (VMEM bound)


def _vmem_limit_bytes():
    # Derive the scoped-VMEM budget from the chip (default scoped limit is
    # well below physical: 16 MiB on v5e, 32 MiB on v6e/v7x) and leave
    # headroom below physical capacity.
    try:
        cap = int(pltpu.get_tpu_info().vmem_capacity_bytes)
    except Exception:
        cap = 64 * 1024 * 1024
    return max(16 * 1024 * 1024, min(cap // 2, 64 * 1024 * 1024))


_VMEM_LIMIT = _vmem_limit_bytes()


def _compiler_params():
    return pltpu.CompilerParams(
        dimension_semantics=("parallel",),
        vmem_limit_bytes=_VMEM_LIMIT,
    )


# ---------------------------------------------------------------------------
# Stats pass: run `n_prev` already-folded (matmul + bias + ReLU) stages, then
# the next stage's matmul + bias, and emit this row-tile's per-channel
# [sum; sum-of-squares] partials (f32).  One output block per tile.
# ---------------------------------------------------------------------------
def _make_stats_kernel(n_prev, tile, n_rows, masked):
    def kernel(*refs):
        x_ref = refs[0]
        out_ref = refs[-1]
        prm = refs[1:-1]                       # (w, b) pairs

        h = x_ref[...]                         # (tile, C_IN)
        for s in range(n_prev):
            h = jnp.dot(h, prm[2 * s][...], preferred_element_type=jnp.float32)
            h = jnp.maximum(h + prm[2 * s + 1][...], 0.0)
        h = jnp.dot(h, prm[2 * n_prev][...], preferred_element_type=jnp.float32)
        h = h + prm[2 * n_prev + 1][...]

        if masked:                             # zero padded rows' contributions
            row0 = pl.program_id(0) * tile
            rid = row0 + lax.broadcasted_iota(jnp.int32, (tile, 1), 0)
            h = jnp.where(rid < n_rows, h, 0.0)

        s1 = jnp.sum(h, axis=0, keepdims=True)       # (1, C)
        s2 = jnp.sum(h * h, axis=0, keepdims=True)   # (1, C)
        out_ref[0] = jnp.concatenate([s1, s2], axis=0)

    return kernel


def _stats_pass(x_pad, chain, c_out, tile, n_rows):
    rp = x_pad.shape[0]
    grid = rp // tile
    masked = rp != n_rows
    flat = []
    for w, b in chain:
        flat.extend([w, b])

    in_specs = [pl.BlockSpec((tile, C_IN), lambda i: (i, 0))]
    # Constant index_maps: weights/biases stay VMEM-resident across tiles.
    in_specs += [pl.BlockSpec(a.shape, lambda i: (0, 0)) for a in flat]

    partials = pl.pallas_call(
        _make_stats_kernel(len(chain) - 1, tile, n_rows, masked),
        grid=(grid,),
        in_specs=in_specs,
        out_specs=pl.BlockSpec((1, 2, c_out), lambda i: (i, 0, 0)),
        out_shape=jax.ShapeDtypeStruct((grid, 2, c_out), jnp.float32),
        compiler_params=_compiler_params(),
    )(x_pad, *flat)
    return jnp.sum(partials, axis=0)           # (2, c_out), tiny host-JAX reduce


def _fold_bn(w, b, g, be, stats, n_rows):
    # Fold BatchNorm (batch stats, biased var, eps=1e-5) into the conv affine.
    mu = stats[0:1, :] / n_rows
    var = stats[1:2, :] / n_rows - mu * mu
    var = jnp.maximum(var, 0.0)                # guard E[x^2]-E[x]^2 cancellation
    scale = g * lax.rsqrt(var + EPS)
    shift = be - mu * scale
    return w * scale, b * scale + shift


# ---------------------------------------------------------------------------
# Final fused pass: folded 3-stage MLP + attention pooling, tb batches/step.
# Outputs: attn_vec (B, 64) and lane-dense attn weights (B, N).
# ---------------------------------------------------------------------------
def _make_final_kernel(tb, n):
    def kernel(x_ref, w1_ref, b1_ref, w2_ref, b2_ref, w3_ref, b3_ref,
               wa_ref, ba_ref, vec_ref, aw_ref):
        h = x_ref[...]                                     # (tb*n, C_IN)
        for w_r, b_r in ((w1_ref, b1_ref), (w2_ref, b2_ref), (w3_ref, b3_ref)):
            h = jnp.dot(h, w_r[...], preferred_element_type=jnp.float32)
            h = jnp.maximum(h + b_r[...], 0.0)             # (tb*n, C3) at the end

        wa = wa_ref[...]                                   # (1, C3)
        ba = ba_ref[...]                                   # (1, 1)
        for t in range(tb):                                # tb <= 8, unrolled
            h_b = h[t * n:(t + 1) * n, :]                  # (n, C3)
            # scores: MXU matmul contracting the channel axis -> (1, n), lane-major
            s = lax.dot_general(wa, h_b, (((1,), (1,)), ((), ())),
                                preferred_element_type=jnp.float32) + ba
            m = jnp.max(s, axis=1, keepdims=True)
            e = jnp.exp(s - m)
            attn = e / jnp.sum(e, axis=1, keepdims=True)   # (1, n) softmax over N
            # weighted sum: (1,n) @ (n,C3) on the MXU
            vec_ref[pl.ds(t, 1), :] = jnp.dot(attn, h_b,
                                              preferred_element_type=jnp.float32)
            aw_ref[pl.ds(t, 1), :] = attn                  # lane-dense write

    return kernel


def _batch_tile(b, n):
    # Largest tb in {8,4,2,1} that divides b and keeps the fused block
    # (x tile + resident f32 activations) comfortably inside VMEM.
    for tb in (8, 4, 2, 1):
        if b % tb == 0 and tb * n <= FINAL_ROWS_TARGET:
            return tb
    return 1


def _final_pass(x2d, b, n, w1f, b1f, w2f, b2f, w3f, b3f, wa, ba):
    tb = _batch_tile(b, n)
    grid = b // tb
    rows = tb * n
    prm = (w1f, b1f, w2f, b2f, w3f, b3f, wa, ba)

    in_specs = [pl.BlockSpec((rows, C_IN), lambda i: (i, 0))]
    in_specs += [pl.BlockSpec(a.shape, lambda i: (0, 0)) for a in prm]

    vec, aw = pl.pallas_call(
        _make_final_kernel(tb, n),
        grid=(grid,),
        in_specs=in_specs,
        out_specs=[pl.BlockSpec((tb, C3), lambda i: (i, 0)),
                   pl.BlockSpec((tb, n), lambda i: (i, 0))],
        out_shape=(jax.ShapeDtypeStruct((b, C3), jnp.float32),
                   jax.ShapeDtypeStruct((b, n), jnp.float32)),
        compiler_params=_compiler_params(),
    )(x2d, *prm)
    return vec, aw


# ---------------------------------------------------------------------------
# Wrapper
# ---------------------------------------------------------------------------
def global_point_parsing_net(x, p):
    b, n, cin = x.shape
    assert cin == C_IN
    n_rows = b * n
    x2d = x.reshape(n_rows, C_IN).astype(jnp.float32)

    # Row tiling for the stats passes (pad to a whole number of tiles; padded
    # rows are masked out of the statistics inside the kernel).
    if n_rows <= ROW_TILE_TARGET:
        tile, rp = n_rows, n_rows
    else:
        tile = max(8, (ROW_TILE_TARGET // 8) * 8)
        rp = ((n_rows + tile - 1) // tile) * tile
    x_pad = x2d if rp == n_rows else jnp.pad(x2d, ((0, rp - n_rows), (0, 0)))

    # Stage 1: stats of x@w1+b1, fold BN1 into (w1, b1).
    st1 = _stats_pass(x_pad, [(p["w1"], p["b1"])], C1, tile, n_rows)
    w1f, b1f = _fold_bn(p["w1"], p["b1"], p["g1"], p["be1"], st1, n_rows)
    # Stage 2 (recompute stage 1 from x; intermediates never touch HBM).
    st2 = _stats_pass(x_pad, [(w1f, b1f), (p["w2"], p["b2"])], C2, tile, n_rows)
    w2f, b2f = _fold_bn(p["w2"], p["b2"], p["g2"], p["be2"], st2, n_rows)
    # Stage 3.
    st3 = _stats_pass(x_pad, [(w1f, b1f), (w2f, b2f), (p["w3"], p["b3"])], C3,
                      tile, n_rows)
    w3f, b3f = _fold_bn(p["w3"], p["b3"], p["g3"], p["be3"], st3, n_rows)

    # Fused final pass: folded MLP chain + attention pooling (no h3 roundtrip).
    vec, aw = _final_pass(x2d, b, n, w1f, b1f, w2f, b2f, w3f, b3f,
                          p["wa"], p["ba"])
    return vec, aw.reshape(b, n, 1)


# ---------------------------------------------------------------------------
# Deterministic parameter init (PyTorch-style uniform fan-in init).
# Conv1d(k=1) weight (out, in, 1) stored transposed as (in, out).
# BN gamma=1, beta=0 (fresh-module defaults).
# ---------------------------------------------------------------------------
def init_params(key):
    ks = jax.random.split(key, 4)

    def lin(k, cin, cout):
        bound = 1.0 / np.sqrt(cin)
        kw, kb = jax.random.split(k)
        w = jax.random.uniform(kw, (cin, cout), jnp.float32, -bound, bound)
        b = jax.random.uniform(kb, (1, cout), jnp.float32, -bound, bound)
        return w, b

    w1, b1 = lin(ks[0], C_IN, C1)
    w2, b2 = lin(ks[1], C1, C2)
    w3, b3 = lin(ks[2], C2, C3)
    wa, ba = lin(ks[3], C3, 1)
    return dict(
        w1=w1, b1=b1, g1=jnp.ones((1, C1), jnp.float32), be1=jnp.zeros((1, C1), jnp.float32),
        w2=w2, b2=b2, g2=jnp.ones((1, C2), jnp.float32), be2=jnp.zeros((1, C2), jnp.float32),
        w3=w3, b3=b3, g3=jnp.ones((1, C3), jnp.float32), be3=jnp.zeros((1, C3), jnp.float32),
        wa=wa.reshape(1, C3), ba=ba.reshape(1, 1),
    )


# Pure-JAX reference for correctness checking (mirrors the PyTorch forward).
def reference(x, p):
    B, N, _ = x.shape
    h = x.reshape(B * N, C_IN)
    for w, b, g, be in [(p["w1"], p["b1"], p["g1"], p["be1"]),
                        (p["w2"], p["b2"], p["g2"], p["be2"]),
                        (p["w3"], p["b3"], p["g3"], p["be3"])]:
        h = h @ w + b
        mu = h.mean(0, keepdims=True)
        var = ((h - mu) ** 2).mean(0, keepdims=True)
        h = (h - mu) / jnp.sqrt(var + EPS) * g + be
        h = jnp.maximum(h, 0.0)
    h = h.reshape(B, N, C3)
    scores = jnp.einsum("bnd,d->bn", h, p["wa"][0]) + p["ba"][0, 0]
    aw = jax.nn.softmax(scores, axis=1)[..., None]
    av = jnp.sum(h * aw, axis=1)
    return av, aw


if __name__ == "__main__":
    key = jax.random.PRNGKey(0)
    kx, kp = jax.random.split(key)
    B, N = 2, 8
    x = jax.random.normal(kx, (B, N, C_IN), jnp.float32)
    params = init_params(kp)

    fwd = jax.jit(global_point_parsing_net)
    attn_vec, attn_w = jax.block_until_ready(fwd(x, params))
    assert attn_vec.shape == (B, C3), attn_vec.shape
    assert attn_w.shape == (B, N, 1), attn_w.shape

    ref_vec, ref_w = reference(x, params)
    np.testing.assert_allclose(np.asarray(attn_vec), np.asarray(ref_vec),
                               rtol=1e-3, atol=1e-4)
    np.testing.assert_allclose(np.asarray(attn_w), np.asarray(ref_w),
                               rtol=1e-3, atol=1e-4)
    print("KERNEL_OK")
</pallas_src>

<mosaic_0001>
module attributes {stable_mosaic.version = 11 : i64} {
  func.func @kernel(%arg0: i32, %arg1: memref<16x27xf32, #tpu.memory_space<vmem>>, %arg2: memref<27x32xf32, #tpu.memory_space<vmem>>, %arg3: memref<1x32xf32, #tpu.memory_space<vmem>>, %arg4: memref<32x48xf32, #tpu.memory_space<vmem>>, %arg5: memref<1x48xf32, #tpu.memory_space<vmem>>, %arg6: memref<1x2x48xf32, #tpu.memory_space<vmem>>) attributes {dimension_semantics = [#tpu.dimension_semantics<parallel>], iteration_bounds = array<i64: 1>, scalar_prefetch = 0 : i64, scratch_operands = 0 : i64, tpu.core_type = #tpu.core_type<tc>, window_params = [{transform_indices = @transform_0, window_bounds = array<i64: 16, 27>}, {pipeline_mode = #tpu.pipeline_mode<synchronous>, transform_indices = @transform_1, window_bounds = array<i64: 27, 32>}, {pipeline_mode = #tpu.pipeline_mode<synchronous>, transform_indices = @transform_2, window_bounds = array<i64: 1, 32>}, {pipeline_mode = #tpu.pipeline_mode<synchronous>, transform_indices = @transform_3, window_bounds = array<i64: 32, 48>}, {pipeline_mode = #tpu.pipeline_mode<synchronous>, transform_indices = @transform_4, window_bounds = array<i64: 1, 48>}, {transform_indices = @transform_5, window_bounds = array<i64: 1, 2, 48>}]} {
    %c0 = arith.constant 0 : index
    %c0_0 = arith.constant 0 : index
    %0 = vector.load %arg1[%c0, %c0_0] : memref<16x27xf32, #tpu.memory_space<vmem>>, vector<16x27xf32>
    %c0_1 = arith.constant 0 : index
    %c0_2 = arith.constant 0 : index
    %1 = vector.load %arg2[%c0_1, %c0_2] : memref<27x32xf32, #tpu.memory_space<vmem>>, vector<27x32xf32>
    %cst = arith.constant dense<0.000000e+00> : vector<16x32xf32>
    %2 = tpu.matmul %0, %1, %cst {dimension_numbers = #tpu.dot_dimension_numbers<[1], [0], [0], [1], [0, 0, 1, 1], [], []>} : vector<16x27xf32>, vector<27x32xf32>, vector<16x32xf32> -> vector<16x32xf32>
    %c0_3 = arith.constant 0 : index
    %c0_4 = arith.constant 0 : index
    %3 = vector.load %arg3[%c0_3, %c0_4] : memref<1x32xf32, #tpu.memory_space<vmem>>, vector<1x32xf32>
    %4 = vector.broadcast %3 : vector<1x32xf32> to vector<16x32xf32>
    %5 = arith.addf %2, %4 : vector<16x32xf32>
    %cst_5 = arith.constant 0.000000e+00 : f32
    %6 = vector.broadcast %cst_5 : f32 to vector<16x32xf32>
    %7 = arith.maximumf %5, %6 : vector<16x32xf32>
    %c0_6 = arith.constant 0 : index
    %c0_7 = arith.constant 0 : index
    %8 = vector.load %arg4[%c0_6, %c0_7] : memref<32x48xf32, #tpu.memory_space<vmem>>, vector<32x48xf32>
    %cst_8 = arith.constant dense<0.000000e+00> : vector<16x48xf32>
    %9 = tpu.matmul %7, %8, %cst_8 {dimension_numbers = #tpu.dot_dimension_numbers<[1], [0], [0], [1], [0, 0, 1, 1], [], []>} : vector<16x32xf32>, vector<32x48xf32>, vector<16x48xf32> -> vector<16x48xf32>
    %c0_9 = arith.constant 0 : index
    %c0_10 = arith.constant 0 : index
    %10 = vector.load %arg5[%c0_9, %c0_10] : memref<1x48xf32, #tpu.memory_space<vmem>>, vector<1x48xf32>
    %11 = vector.broadcast %10 : vector<1x48xf32> to vector<16x48xf32>
    %12 = arith.addf %9, %11 : vector<16x48xf32>
    %cst_11 = arith.constant dense<0.000000e+00> : vector<48xf32>
    %13 = vector.multi_reduction <add>, %12, %cst_11 [0] : vector<16x48xf32> to vector<48xf32>
    %14 = vector.shape_cast %13 : vector<48xf32> to vector<1x48xf32>
    %15 = arith.mulf %12, %12 : vector<16x48xf32>
    %cst_12 = arith.constant dense<0.000000e+00> : vector<48xf32>
    %16 = vector.multi_reduction <add>, %15, %cst_12 [0] : vector<16x48xf32> to vector<48xf32>
    %17 = vector.shape_cast %16 : vector<48xf32> to vector<1x48xf32>
    %18 = tpu.concatenate %14, %17 in 0 : vector<1x48xf32>, vector<1x48xf32> -> vector<2x48xf32>
    %c0_13 = arith.constant 0 : index
    %c0_14 = arith.constant 0 : index
    %c0_15 = arith.constant 0 : index
    %19 = vector.load %arg6[%c0_13, %c0_14, %c0_15] : memref<1x2x48xf32, #tpu.memory_space<vmem>>, vector<1x2x48xf32>
    %20 = vector.shape_cast %19 : vector<1x2x48xf32> to vector<2x48xf32>
    %21 = vector.shape_cast %18 : vector<2x48xf32> to vector<1x2x48xf32>
    tpu.vector_store %arg6[%c0_13, %c0_14, %c0_15], %21 {strides = array<i32>} : memref<1x2x48xf32, #tpu.memory_space<vmem>>, vector<1x2x48xf32>,
    return
  }
  func.func @transform_0(%arg0: i32) -> (i32, i32) {
    %c0_i32 = arith.constant 0 : i32
    %c0_i32_0 = arith.constant 0 : i32
    return %arg0, %c0_i32 : i32, i32
  }
  func.func @transform_1(%arg0: i32) -> (i32, i32) {
    %c0_i32 = arith.constant 0 : i32
    %c0_i32_0 = arith.constant 0 : i32
    %c0_i32_1 = arith.constant 0 : i32
    return %c0_i32, %c0_i32_0 : i32, i32
  }
  func.func @transform_2(%arg0: i32) -> (i32, i32) {
    %c0_i32 = arith.constant 0 : i32
    %c0_i32_0 = arith.constant 0 : i32
    %c0_i32_1 = arith.constant 0 : i32
    return %c0_i32, %c0_i32_0 : i32, i32
  }
  func.func @transform_3(%arg0: i32) -> (i32, i32) {
    %c0_i32 = arith.constant 0 : i32
    %c0_i32_0 = arith.constant 0 : i32
    %c0_i32_1 = arith.constant 0 : i32
    return %c0_i32, %c0_i32_0 : i32, i32
  }
  func.func @transform_4(%arg0: i32) -> (i32, i32) {
    %c0_i32 = arith.constant 0 : i32
    %c0_i32_0 = arith.constant 0 : i32
    %c0_i32_1 = arith.constant 0 : i32
    return %c0_i32, %c0_i32_0 : i32, i32
  }
  func.func @transform_5(%arg0: i32) -> (i32, i32, i32) {
    %c0_i32 = arith.constant 0 : i32
    %c0_i32_0 = arith.constant 0 : i32
    %c0_i32_1 = arith.constant 0 : i32
    return %arg0, %c0_i32, %c0_i32_0 : i32, i32, i32
  }
}

module attributes {stable_mosaic.version = 11 : i64} {
  func.func @kernel(%arg0: i32, %arg1: memref<16x27xf32, #tpu.memory_space<vmem>>, %arg2: memref<27x32xf32, #tpu.memory_space<vmem>>, %arg3: memref<1x32xf32, #tpu.memory_space<vmem>>, %arg4: memref<1x2x32xf32, #tpu.memory_space<vmem>>) attributes {dimension_semantics = [#tpu.dimension_semantics<parallel>], iteration_bounds = array<i64: 1>, scalar_prefetch = 0 : i64, scratch_operands = 0 : i64, tpu.core_type = #tpu.core_type<tc>, window_params = [{transform_indices = @transform_0, window_bounds = array<i64: 16, 27>}, {pipeline_mode = #tpu.pipeline_mode<synchronous>, transform_indices = @transform_1, window_bounds = array<i64: 27, 32>}, {pipeline_mode = #tpu.pipeline_mode<synchronous>, transform_indices = @transform_2, window_bounds = array<i64: 1, 32>}, {transform_indices = @transform_3, window_bounds = array<i64: 1, 2, 32>}]} {
    %c0 = arith.constant 0 : index
    %c0_0 = arith.constant 0 : index
    %0 = vector.load %arg1[%c0, %c0_0] : memref<16x27xf32, #tpu.memory_space<vmem>>, vector<16x27xf32>
    %c0_1 = arith.constant 0 : index
    %c0_2 = arith.constant 0 : index
    %1 = vector.load %arg2[%c0_1, %c0_2] : memref<27x32xf32, #tpu.memory_space<vmem>>, vector<27x32xf32>
    %cst = arith.constant dense<0.000000e+00> : vector<16x32xf32>
    %2 = tpu.matmul %0, %1, %cst {dimension_numbers = #tpu.dot_dimension_numbers<[1], [0], [0], [1], [0, 0, 1, 1], [], []>} : vector<16x27xf32>, vector<27x32xf32>, vector<16x32xf32> -> vector<16x32xf32>
    %c0_3 = arith.constant 0 : index
    %c0_4 = arith.constant 0 : index
    %3 = vector.load %arg3[%c0_3, %c0_4] : memref<1x32xf32, #tpu.memory_space<vmem>>, vector<1x32xf32>
    %4 = vector.broadcast %3 : vector<1x32xf32> to vector<16x32xf32>
    %5 = arith.addf %2, %4 : vector<16x32xf32>
    %cst_5 = arith.constant dense<0.000000e+00> : vector<32xf32>
    %6 = vector.multi_reduction <add>, %5, %cst_5 [0] : vector<16x32xf32> to vector<32xf32>
    %7 = vector.shape_cast %6 : vector<32xf32> to vector<1x32xf32>
    %8 = arith.mulf %5, %5 : vector<16x32xf32>
    %cst_6 = arith.constant dense<0.000000e+00> : vector<32xf32>
    %9 = vector.multi_reduction <add>, %8, %cst_6 [0] : vector<16x32xf32> to vector<32xf32>
    %10 = vector.shape_cast %9 : vector<32xf32> to vector<1x32xf32>
    %11 = tpu.concatenate %7, %10 in 0 : vector<1x32xf32>, vector<1x32xf32> -> vector<2x32xf32>
    %c0_7 = arith.constant 0 : index
    %c0_8 = arith.constant 0 : index
    %c0_9 = arith.constant 0 : index
    %12 = vector.load %arg4[%c0_7, %c0_8, %c0_9] : memref<1x2x32xf32, #tpu.memory_space<vmem>>, vector<1x2x32xf32>
    %13 = vector.shape_cast %12 : vector<1x2x32xf32> to vector<2x32xf32>
    %14 = vector.shape_cast %11 : vector<2x32xf32> to vector<1x2x32xf32>
    tpu.vector_store %arg4[%c0_7, %c0_8, %c0_9], %14 {strides = array<i32>} : memref<1x2x32xf32, #tpu.memory_space<vmem>>, vector<1x2x32xf32>,
    return
  }
  func.func @transform_0(%arg0: i32) -> (i32, i32) {
    %c0_i32 = arith.constant 0 : i32
    %c0_i32_0 = arith.constant 0 : i32
    return %arg0, %c0_i32 : i32, i32
  }
  func.func @transform_1(%arg0: i32) -> (i32, i32) {
    %c0_i32 = arith.constant 0 : i32
    %c0_i32_0 = arith.constant 0 : i32
    %c0_i32_1 = arith.constant 0 : i32
    return %c0_i32, %c0_i32_0 : i32, i32
  }
  func.func @transform_2(%arg0: i32) -> (i32, i32) {
    %c0_i32 = arith.constant 0 : i32
    %c0_i32_0 = arith.constant 0 : i32
    %c0_i32_1 = arith.constant 0 : i32
    return %c0_i32, %c0_i32_0 : i32, i32
  }
  func.func @transform_3(%arg0: i32) -> (i32, i32, i32) {
    %c0_i32 = arith.constant 0 : i32
    %c0_i32_0 = arith.constant 0 : i32
    %c0_i32_1 = arith.constant 0 : i32
    return %arg0, %c0_i32, %c0_i32_0 : i32, i32, i32
  }
}

module attributes {stable_mosaic.version = 11 : i64} {
  func.func @kernel(%arg0: i32, %arg1: memref<16x27xf32, #tpu.memory_space<vmem>>, %arg2: memref<27x32xf32, #tpu.memory_space<vmem>>, %arg3: memref<1x32xf32, #tpu.memory_space<vmem>>, %arg4: memref<32x48xf32, #tpu.memory_space<vmem>>, %arg5: memref<1x48xf32, #tpu.memory_space<vmem>>, %arg6: memref<48x64xf32, #tpu.memory_space<vmem>>, %arg7: memref<1x64xf32, #tpu.memory_space<vmem>>, %arg8: memref<1x2x64xf32, #tpu.memory_space<vmem>>) attributes {dimension_semantics = [#tpu.dimension_semantics<parallel>], iteration_bounds = array<i64: 1>, scalar_prefetch = 0 : i64, scratch_operands = 0 : i64, tpu.core_type = #tpu.core_type<tc>, window_params = [{transform_indices = @transform_0, window_bounds = array<i64: 16, 27>}, {pipeline_mode = #tpu.pipeline_mode<synchronous>, transform_indices = @transform_1, window_bounds = array<i64: 27, 32>}, {pipeline_mode = #tpu.pipeline_mode<synchronous>, transform_indices = @transform_2, window_bounds = array<i64: 1, 32>}, {pipeline_mode = #tpu.pipeline_mode<synchronous>, transform_indices = @transform_3, window_bounds = array<i64: 32, 48>}, {pipeline_mode = #tpu.pipeline_mode<synchronous>, transform_indices = @transform_4, window_bounds = array<i64: 1, 48>}, {pipeline_mode = #tpu.pipeline_mode<synchronous>, transform_indices = @transform_5, window_bounds = array<i64: 48, 64>}, {pipeline_mode = #tpu.pipeline_mode<synchronous>, transform_indices = @transform_6, window_bounds = array<i64: 1, 64>}, {transform_indices = @transform_7, window_bounds = array<i64: 1, 2, 64>}]} {
    %c0 = arith.constant 0 : index
    %c0_0 = arith.constant 0 : index
    %0 = vector.load %arg1[%c0, %c0_0] : memref<16x27xf32, #tpu.memory_space<vmem>>, vector<16x27xf32>
    %c0_1 = arith.constant 0 : index
    %c0_2 = arith.constant 0 : index
    %1 = vector.load %arg2[%c0_1, %c0_2] : memref<27x32xf32, #tpu.memory_space<vmem>>, vector<27x32xf32>
    %cst = arith.constant dense<0.000000e+00> : vector<16x32xf32>
    %2 = tpu.matmul %0, %1, %cst {dimension_numbers = #tpu.dot_dimension_numbers<[1], [0], [0], [1], [0, 0, 1, 1], [], []>} : vector<16x27xf32>, vector<27x32xf32>, vector<16x32xf32> -> vector<16x32xf32>
    %c0_3 = arith.constant 0 : index
    %c0_4 = arith.constant 0 : index
    %3 = vector.load %arg3[%c0_3, %c0_4] : memref<1x32xf32, #tpu.memory_space<vmem>>, vector<1x32xf32>
    %4 = vector.broadcast %3 : vector<1x32xf32> to vector<16x32xf32>
    %5 = arith.addf %2, %4 : vector<16x32xf32>
    %cst_5 = arith.constant 0.000000e+00 : f32
    %6 = vector.broadcast %cst_5 : f32 to vector<16x32xf32>
    %7 = arith.maximumf %5, %6 : vector<16x32xf32>
    %c0_6 = arith.constant 0 : index
    %c0_7 = arith.constant 0 : index
    %8 = vector.load %arg4[%c0_6, %c0_7] : memref<32x48xf32, #tpu.memory_space<vmem>>, vector<32x48xf32>
    %cst_8 = arith.constant dense<0.000000e+00> : vector<16x48xf32>
    %9 = tpu.matmul %7, %8, %cst_8 {dimension_numbers = #tpu.dot_dimension_numbers<[1], [0], [0], [1], [0, 0, 1, 1], [], []>} : vector<16x32xf32>, vector<32x48xf32>, vector<16x48xf32> -> vector<16x48xf32>
    %c0_9 = arith.constant 0 : index
    %c0_10 = arith.constant 0 : index
    %10 = vector.load %arg5[%c0_9, %c0_10] : memref<1x48xf32, #tpu.memory_space<vmem>>, vector<1x48xf32>
    %11 = vector.broadcast %10 : vector<1x48xf32> to vector<16x48xf32>
    %12 = arith.addf %9, %11 : vector<16x48xf32>
    %cst_11 = arith.constant 0.000000e+00 : f32
    %13 = vector.broadcast %cst_11 : f32 to vector<16x48xf32>
    %14 = arith.maximumf %12, %13 : vector<16x48xf32>
    %c0_12 = arith.constant 0 : index
    %c0_13 = arith.constant 0 : index
    %15 = vector.load %arg6[%c0_12, %c0_13] : memref<48x64xf32, #tpu.memory_space<vmem>>, vector<48x64xf32>
    %cst_14 = arith.constant dense<0.000000e+00> : vector<16x64xf32>
    %16 = tpu.matmul %14, %15, %cst_14 {dimension_numbers = #tpu.dot_dimension_numbers<[1], [0], [0], [1], [0, 0, 1, 1], [], []>} : vector<16x48xf32>, vector<48x64xf32>, vector<16x64xf32> -> vector<16x64xf32>
    %c0_15 = arith.constant 0 : index
    %c0_16 = arith.constant 0 : index
    %17 = vector.load %arg7[%c0_15, %c0_16] : memref<1x64xf32, #tpu.memory_space<vmem>>, vector<1x64xf32>
    %18 = vector.broadcast %17 : vector<1x64xf32> to vector<16x64xf32>
    %19 = arith.addf %16, %18 : vector<16x64xf32>
    %cst_17 = arith.constant dense<0.000000e+00> : vector<64xf32>
    %20 = vector.multi_reduction <add>, %19, %cst_17 [0] : vector<16x64xf32> to vector<64xf32>
    %21 = vector.shape_cast %20 : vector<64xf32> to vector<1x64xf32>
    %22 = arith.mulf %19, %19 : vector<16x64xf32>
    %cst_18 = arith.constant dense<0.000000e+00> : vector<64xf32>
    %23 = vector.multi_reduction <add>, %22, %cst_18 [0] : vector<16x64xf32> to vector<64xf32>
    %24 = vector.shape_cast %23 : vector<64xf32> to vector<1x64xf32>
    %25 = tpu.concatenate %21, %24 in 0 : vector<1x64xf32>, vector<1x64xf32> -> vector<2x64xf32>
    %c0_19 = arith.constant 0 : index
    %c0_20 = arith.constant 0 : index
    %c0_21 = arith.constant 0 : index
    %26 = vector.load %arg8[%c0_19, %c0_20, %c0_21] : memref<1x2x64xf32, #tpu.memory_space<vmem>>, vector<1x2x64xf32>
    %27 = vector.shape_cast %26 : vector<1x2x64xf32> to vector<2x64xf32>
    %28 = vector.shape_cast %25 : vector<2x64xf32> to vector<1x2x64xf32>
    tpu.vector_store %arg8[%c0_19, %c0_20, %c0_21], %28 {strides = array<i32>} : memref<1x2x64xf32, #tpu.memory_space<vmem>>, vector<1x2x64xf32>,
    return
  }
  func.func @transform_0(%arg0: i32) -> (i32, i32) {
    %c0_i32 = arith.constant 0 : i32
    %c0_i32_0 = arith.constant 0 : i32
    return %arg0, %c0_i32 : i32, i32
  }
  func.func @transform_1(%arg0: i32) -> (i32, i32) {
    %c0_i32 = arith.constant 0 : i32
    %c0_i32_0 = arith.constant 0 : i32
    %c0_i32_1 = arith.constant 0 : i32
    return %c0_i32, %c0_i32_0 : i32, i32
  }
  func.func @transform_2(%arg0: i32) -> (i32, i32) {
    %c0_i32 = arith.constant 0 : i32
    %c0_i32_0 = arith.constant 0 : i32
    %c0_i32_1 = arith.constant 0 : i32
    return %c0_i32, %c0_i32_0 : i32, i32
  }
  func.func @transform_3(%arg0: i32) -> (i32, i32) {
    %c0_i32 = arith.constant 0 : i32
    %c0_i32_0 = arith.constant 0 : i32
    %c0_i32_1 = arith.constant 0 : i32
    return %c0_i32, %c0_i32_0 : i32, i32
  }
  func.func @transform_4(%arg0: i32) -> (i32, i32) {
    %c0_i32 = arith.constant 0 : i32
    %c0_i32_0 = arith.constant 0 : i32
    %c0_i32_1 = arith.constant 0 : i32
    return %c0_i32, %c0_i32_0 : i32, i32
  }
  func.func @transform_5(%arg0: i32) -> (i32, i32) {
    %c0_i32 = arith.constant 0 : i32
    %c0_i32_0 = arith.constant 0 : i32
    %c0_i32_1 = arith.constant 0 : i32
    return %c0_i32, %c0_i32_0 : i32, i32
  }
  func.func @transform_6(%arg0: i32) -> (i32, i32) {
    %c0_i32 = arith.constant 0 : i32
    %c0_i32_0 = arith.constant 0 : i32
    %c0_i32_1 = arith.constant 0 : i32
    return %c0_i32, %c0_i32_0 : i32, i32
  }
  func.func @transform_7(%arg0: i32) -> (i32, i32, i32) {
    %c0_i32 = arith.constant 0 : i32
    %c0_i32_0 = arith.constant 0 : i32
    %c0_i32_1 = arith.constant 0 : i32
    return %arg0, %c0_i32, %c0_i32_0 : i32, i32, i32
  }
}

module attributes {stable_mosaic.version = 11 : i64} {
  func.func @kernel(%arg0: i32, %arg1: memref<16x27xf32, #tpu.memory_space<vmem>>, %arg2: memref<27x32xf32, #tpu.memory_space<vmem>>, %arg3: memref<1x32xf32, #tpu.memory_space<vmem>>, %arg4: memref<32x48xf32, #tpu.memory_space<vmem>>, %arg5: memref<1x48xf32, #tpu.memory_space<vmem>>, %arg6: memref<48x64xf32, #tpu.memory_space<vmem>>, %arg7: memref<1x64xf32, #tpu.memory_space<vmem>>, %arg8: memref<1x64xf32, #tpu.memory_space<vmem>>, %arg9: memref<1x1xf32, #tpu.memory_space<vmem>>, %arg10: memref<2x64xf32, #tpu.memory_space<vmem>>, %arg11: memref<2x8xf32, #tpu.memory_space<vmem>>) attributes {dimension_semantics = [#tpu.dimension_semantics<parallel>], iteration_bounds = array<i64: 1>, scalar_prefetch = 0 : i64, scratch_operands = 0 : i64, tpu.core_type = #tpu.core_type<tc>, window_params = [{transform_indices = @transform_0, window_bounds = array<i64: 16, 27>}, {pipeline_mode = #tpu.pipeline_mode<synchronous>, transform_indices = @transform_1, window_bounds = array<i64: 27, 32>}, {pipeline_mode = #tpu.pipeline_mode<synchronous>, transform_indices = @transform_2, window_bounds = array<i64: 1, 32>}, {pipeline_mode = #tpu.pipeline_mode<synchronous>, transform_indices = @transform_3, window_bounds = array<i64: 32, 48>}, {pipeline_mode = #tpu.pipeline_mode<synchronous>, transform_indices = @transform_4, window_bounds = array<i64: 1, 48>}, {pipeline_mode = #tpu.pipeline_mode<synchronous>, transform_indices = @transform_5, window_bounds = array<i64: 48, 64>}, {pipeline_mode = #tpu.pipeline_mode<synchronous>, transform_indices = @transform_6, window_bounds = array<i64: 1, 64>}, {pipeline_mode = #tpu.pipeline_mode<synchronous>, transform_indices = @transform_7, window_bounds = array<i64: 1, 64>}, {pipeline_mode = #tpu.pipeline_mode<synchronous>, transform_indices = @transform_8, window_bounds = array<i64: 1, 1>}, {transform_indices = @transform_9, window_bounds = array<i64: 2, 64>}, {transform_indices = @transform_10, window_bounds = array<i64: 2, 8>}]} {
    %c0 = arith.constant 0 : index
    %c0_0 = arith.constant 0 : index
    %0 = vector.load %arg1[%c0, %c0_0] : memref<16x27xf32, #tpu.memory_space<vmem>>, vector<16x27xf32>
    %c0_1 = arith.constant 0 : index
    %c0_2 = arith.constant 0 : index
    %1 = vector.load %arg2[%c0_1, %c0_2] : memref<27x32xf32, #tpu.memory_space<vmem>>, vector<27x32xf32>
    %cst = arith.constant dense<0.000000e+00> : vector<16x32xf32>
    %2 = tpu.matmul %0, %1, %cst {dimension_numbers = #tpu.dot_dimension_numbers<[1], [0], [0], [1], [0, 0, 1, 1], [], []>} : vector<16x27xf32>, vector<27x32xf32>, vector<16x32xf32> -> vector<16x32xf32>
    %c0_3 = arith.constant 0 : index
    %c0_4 = arith.constant 0 : index
    %3 = vector.load %arg3[%c0_3, %c0_4] : memref<1x32xf32, #tpu.memory_space<vmem>>, vector<1x32xf32>
    %4 = vector.broadcast %3 : vector<1x32xf32> to vector<16x32xf32>
    %5 = arith.addf %2, %4 : vector<16x32xf32>
    %cst_5 = arith.constant 0.000000e+00 : f32
    %6 = vector.broadcast %cst_5 : f32 to vector<16x32xf32>
    %7 = arith.maximumf %5, %6 : vector<16x32xf32>
    %c0_6 = arith.constant 0 : index
    %c0_7 = arith.constant 0 : index
    %8 = vector.load %arg4[%c0_6, %c0_7] : memref<32x48xf32, #tpu.memory_space<vmem>>, vector<32x48xf32>
    %cst_8 = arith.constant dense<0.000000e+00> : vector<16x48xf32>
    %9 = tpu.matmul %7, %8, %cst_8 {dimension_numbers = #tpu.dot_dimension_numbers<[1], [0], [0], [1], [0, 0, 1, 1], [], []>} : vector<16x32xf32>, vector<32x48xf32>, vector<16x48xf32> -> vector<16x48xf32>
    %c0_9 = arith.constant 0 : index
    %c0_10 = arith.constant 0 : index
    %10 = vector.load %arg5[%c0_9, %c0_10] : memref<1x48xf32, #tpu.memory_space<vmem>>, vector<1x48xf32>
    %11 = vector.broadcast %10 : vector<1x48xf32> to vector<16x48xf32>
    %12 = arith.addf %9, %11 : vector<16x48xf32>
    %cst_11 = arith.constant 0.000000e+00 : f32
    %13 = vector.broadcast %cst_11 : f32 to vector<16x48xf32>
    %14 = arith.maximumf %12, %13 : vector<16x48xf32>
    %c0_12 = arith.constant 0 : index
    %c0_13 = arith.constant 0 : index
    %15 = vector.load %arg6[%c0_12, %c0_13] : memref<48x64xf32, #tpu.memory_space<vmem>>, vector<48x64xf32>
    %cst_14 = arith.constant dense<0.000000e+00> : vector<16x64xf32>
    %16 = tpu.matmul %14, %15, %cst_14 {dimension_numbers = #tpu.dot_dimension_numbers<[1], [0], [0], [1], [0, 0, 1, 1], [], []>} : vector<16x48xf32>, vector<48x64xf32>, vector<16x64xf32> -> vector<16x64xf32>
    %c0_15 = arith.constant 0 : index
    %c0_16 = arith.constant 0 : index
    %17 = vector.load %arg7[%c0_15, %c0_16] : memref<1x64xf32, #tpu.memory_space<vmem>>, vector<1x64xf32>
    %18 = vector.broadcast %17 : vector<1x64xf32> to vector<16x64xf32>
    %19 = arith.addf %16, %18 : vector<16x64xf32>
    %cst_17 = arith.constant 0.000000e+00 : f32
    %20 = vector.broadcast %cst_17 : f32 to vector<16x64xf32>
    %21 = arith.maximumf %19, %20 : vector<16x64xf32>
    %c0_18 = arith.constant 0 : index
    %c0_19 = arith.constant 0 : index
    %22 = vector.load %arg8[%c0_18, %c0_19] : memref<1x64xf32, #tpu.memory_space<vmem>>, vector<1x64xf32>
    %c0_20 = arith.constant 0 : index
    %c0_21 = arith.constant 0 : index
    %23 = vector.load %arg9[%c0_20, %c0_21] : memref<1x1xf32, #tpu.memory_space<vmem>>, vector<1x1xf32>
    %24 = vector.extract_strided_slice %21 {offsets = [0, 0], sizes = [8, 64], strides = [1, 1]} : vector<16x64xf32> to vector<8x64xf32>
    %cst_22 = arith.constant dense<0.000000e+00> : vector<1x8xf32>
    %25 = tpu.matmul %22, %24, %cst_22 {dimension_numbers = #tpu.dot_dimension_numbers<[1], [1], [0], [0], [0, 0, 1, 0], [], []>} : vector<1x64xf32>, vector<8x64xf32>, vector<1x8xf32> -> vector<1x8xf32>
    %26 = vector.broadcast %23 : vector<1x1xf32> to vector<1x8xf32>
    %27 = arith.addf %25, %26 : vector<1x8xf32>
    %cst_23 = arith.constant dense<0xFF800000> : vector<1xf32>
    %28 = vector.multi_reduction <maximumf>, %27, %cst_23 [1] : vector<1x8xf32> to vector<1xf32>
    %29 = vector.shape_cast %28 : vector<1xf32> to vector<1x1xf32>
    %30 = vector.broadcast %29 : vector<1x1xf32> to vector<1x8xf32>
    %31 = arith.subf %27, %30 : vector<1x8xf32>
    %32 = math.exp %31 : vector<1x8xf32>
    %cst_24 = arith.constant dense<0.000000e+00> : vector<1xf32>
    %33 = vector.multi_reduction <add>, %32, %cst_24 [1] : vector<1x8xf32> to vector<1xf32>
    %34 = vector.shape_cast %33 : vector<1xf32> to vector<1x1xf32>
    %35 = vector.broadcast %34 : vector<1x1xf32> to vector<1x8xf32>
    %36 = arith.divf %32, %35 : vector<1x8xf32>
    %cst_25 = arith.constant dense<0.000000e+00> : vector<1x64xf32>
    %37 = tpu.matmul %36, %24, %cst_25 {dimension_numbers = #tpu.dot_dimension_numbers<[1], [0], [0], [1], [0, 0, 1, 1], [], []>} : vector<1x8xf32>, vector<8x64xf32>, vector<1x64xf32> -> vector<1x64xf32>
    %c0_26 = arith.constant 0 : index
    %c0_27 = arith.constant 0 : index
    %38 = vector.load %arg10[%c0_26, %c0_27] : memref<2x64xf32, #tpu.memory_space<vmem>>, vector<1x64xf32>
    tpu.vector_store %arg10[%c0_26, %c0_27], %37 {strides = array<i32>} : memref<2x64xf32, #tpu.memory_space<vmem>>, vector<1x64xf32>,
    %c0_28 = arith.constant 0 : index
    %c0_29 = arith.constant 0 : index
    %39 = vector.load %arg11[%c0_28, %c0_29] : memref<2x8xf32, #tpu.memory_space<vmem>>, vector<1x8xf32>
    tpu.vector_store %arg11[%c0_28, %c0_29], %36 {strides = array<i32>} : memref<2x8xf32, #tpu.memory_space<vmem>>, vector<1x8xf32>,
    %40 = vector.extract_strided_slice %21 {offsets = [8, 0], sizes = [8, 64], strides = [1, 1]} : vector<16x64xf32> to vector<8x64xf32>
    %cst_30 = arith.constant dense<0.000000e+00> : vector<1x8xf32>
    %41 = tpu.matmul %22, %40, %cst_30 {dimension_numbers = #tpu.dot_dimension_numbers<[1], [1], [0], [0], [0, 0, 1, 0], [], []>} : vector<1x64xf32>, vector<8x64xf32>, vector<1x8xf32> -> vector<1x8xf32>
    %42 = vector.broadcast %23 : vector<1x1xf32> to vector<1x8xf32>
    %43 = arith.addf %41, %42 : vector<1x8xf32>
    %cst_31 = arith.constant dense<0xFF800000> : vector<1xf32>
    %44 = vector.multi_reduction <maximumf>, %43, %cst_31 [1] : vector<1x8xf32> to vector<1xf32>
    %45 = vector.shape_cast %44 : vector<1xf32> to vector<1x1xf32>
    %46 = vector.broadcast %45 : vector<1x1xf32> to vector<1x8xf32>
    %47 = arith.subf %43, %46 : vector<1x8xf32>
    %48 = math.exp %47 : vector<1x8xf32>
    %cst_32 = arith.constant dense<0.000000e+00> : vector<1xf32>
    %49 = vector.multi_reduction <add>, %48, %cst_32 [1] : vector<1x8xf32> to vector<1xf32>
    %50 = vector.shape_cast %49 : vector<1xf32> to vector<1x1xf32>
    %51 = vector.broadcast %50 : vector<1x1xf32> to vector<1x8xf32>
    %52 = arith.divf %48, %51 : vector<1x8xf32>
    %cst_33 = arith.constant dense<0.000000e+00> : vector<1x64xf32>
    %53 = tpu.matmul %52, %40, %cst_33 {dimension_numbers = #tpu.dot_dimension_numbers<[1], [0], [0], [1], [0, 0, 1, 1], [], []>} : vector<1x8xf32>, vector<8x64xf32>, vector<1x64xf32> -> vector<1x64xf32>
    %c1 = arith.constant 1 : index
    %c0_34 = arith.constant 0 : index
    %54 = vector.load %arg10[%c1, %c0_34] : memref<2x64xf32, #tpu.memory_space<vmem>>, vector<1x64xf32>
    tpu.vector_store %arg10[%c1, %c0_34], %53 {strides = array<i32>} : memref<2x64xf32, #tpu.memory_space<vmem>>, vector<1x64xf32>,
    %c1_35 = arith.constant 1 : index
    %c0_36 = arith.constant 0 : index
    %55 = vector.load %arg11[%c1_35, %c0_36] : memref<2x8xf32, #tpu.memory_space<vmem>>, vector<1x8xf32>
    tpu.vector_store %arg11[%c1_35, %c0_36], %52 {strides = array<i32>} : memref<2x8xf32, #tpu.memory_space<vmem>>, vector<1x8xf32>,
    return
  }
  func.func @transform_0(%arg0: i32) -> (i32, i32) {
    %c0_i32 = arith.constant 0 : i32
    %c0_i32_0 = arith.constant 0 : i32
    return %arg0, %c0_i32 : i32, i32
  }
  func.func @transform_1(%arg0: i32) -> (i32, i32) {
    %c0_i32 = arith.constant 0 : i32
    %c0_i32_0 = arith.constant 0 : i32
    %c0_i32_1 = arith.constant 0 : i32
    return %c0_i32, %c0_i32_0 : i32, i32
  }
  func.func @transform_2(%arg0: i32) -> (i32, i32) {
    %c0_i32 = arith.constant 0 : i32
    %c0_i32_0 = arith.constant 0 : i32
    %c0_i32_1 = arith.constant 0 : i32
    return %c0_i32, %c0_i32_0 : i32, i32
  }
  func.func @transform_3(%arg0: i32) -> (i32, i32) {
    %c0_i32 = arith.constant 0 : i32
    %c0_i32_0 = arith.constant 0 : i32
    %c0_i32_1 = arith.constant 0 : i32
    return %c0_i32, %c0_i32_0 : i32, i32
  }
  func.func @transform_4(%arg0: i32) -> (i32, i32) {
    %c0_i32 = arith.constant 0 : i32
    %c0_i32_0 = arith.constant 0 : i32
    %c0_i32_1 = arith.constant 0 : i32
    return %c0_i32, %c0_i32_0 : i32, i32
  }
  func.func @transform_5(%arg0: i32) -> (i32, i32) {
    %c0_i32 = arith.constant 0 : i32
    %c0_i32_0 = arith.constant 0 : i32
    %c0_i32_1 = arith.constant 0 : i32
    return %c0_i32, %c0_i32_0 : i32, i32
  }
  func.func @transform_6(%arg0: i32) -> (i32, i32) {
    %c0_i32 = arith.constant 0 : i32
    %c0_i32_0 = arith.constant 0 : i32
    %c0_i32_1 = arith.constant 0 : i32
    return %c0_i32, %c0_i32_0 : i32, i32
  }
  func.func @transform_7(%arg0: i32) -> (i32, i32) {
    %c0_i32 = arith.constant 0 : i32
    %c0_i32_0 = arith.constant 0 : i32
    %c0_i32_1 = arith.constant 0 : i32
    return %c0_i32, %c0_i32_0 : i32, i32
  }
  func.func @transform_8(%arg0: i32) -> (i32, i32) {
    %c0_i32 = arith.constant 0 : i32
    %c0_i32_0 = arith.constant 0 : i32
    %c0_i32_1 = arith.constant 0 : i32
    return %c0_i32, %c0_i32_0 : i32, i32
  }
  func.func @transform_9(%arg0: i32) -> (i32, i32) {
    %c0_i32 = arith.constant 0 : i32
    %c0_i32_0 = arith.constant 0 : i32
    return %arg0, %c0_i32 : i32, i32
  }
  func.func @transform_10(%arg0: i32) -> (i32, i32) {
    %c0_i32 = arith.constant 0 : i32
    %c0_i32_0 = arith.constant 0 : i32
    return %arg0, %c0_i32 : i32, i32
  }
}

</mosaic_0001>

<bundles_post_ra>
// kernel: global_point_parsing_net.4
= control target key start
LH: loop header
LB: loop body
LE: loop exit
PB: predicated region body
PF: predicated region fallthrough
CT: control target
= control target key end

     0   :  { %8 = vsyncpa [#allocation3], 0  ;;  %s216_s12 = smov [#allocation2]   ;;  %s272_s0 = inlined_call_operand.hbm [shape: f32[16,27], index: 0, kind: input, shape index: {}]   ;;  %s273_s1 = inlined_call_operand.vmem [shape: f32[27,32], index: 1, kind: input, shape index: {}]   ;;  %s274_s2 = inlined_call_operand.vmem [shape: f32[1,32], index: 2, kind: input, shape index: {}]   ;;  %s275_s3 = inlined_call_operand.vmem [shape: f32[1,2,32], index: 3, kind: output, shape index: {}]  }
   0x1   :  { %s14_s13 = sshll.u32 %s216_s12, 4  ;;  %s192_s16 = scalar_lea.hbm %s272_s0, 256  ;;  %s15_s13 = int_to_ptr.vmem [resolvable:$true] %s14_s13 }
   0x2   :  { %p193_p0 = scmp.ne.s32.totalorder %s272_s0, %s192_s16  ;;  %p196_p1 = scmp.lt.u32.totalorder %s192_s16, %s272_s0 }
   0x4   :  { %p198_p2 = pnand %p196_p1, %p193_p0 }
   0x6   :  { %201 = shalt.err (!%p198_p2)
}
   0x7   :  { %s202_s21 = scalar_lea.vmem %s15_s13, 256  ;;  %p207_p4 = scmp.lt.s32.totalorder %s15_s13, %s15_s13 }
   0x8   :  { %p203_p3 = scmp.ne.s32.totalorder %s15_s13, %s202_s21  ;;  %p208_p5 = scmp.lt.s32.totalorder %s202_s21, %s202_s21 }
   0xa   :  { %p209_p6 = por %p208_p5, %p207_p4 }
   0xc   :  { %p210_p7 = pnand %p209_p6, %p203_p3 }
   0xe   :  { %213 = shalt.err (!%p210_p7)
}
   0xf   :  { %s217_s22 = smov 128   ;;  %s218_s23 = smov 8  }
  0x10   :  { %20 = dma.hbm_to_vmem [thread:$0]  %s272_s0, 256, %s15_s13, [#allocation3], %s217_s22, %s217_s22, %s218_s23  }
  0x11   :  { %214 = dma.done.wait [#allocation3], 256  }
  0x12   :  { %215 = vsyncadd [#allocation3], 4294967040  ;;  %vm48_vm0 = vcmask 1042432   ;;  %vm41_vm1 = vcmask 220160   ;;  %v30_v0 = vld [vmem:[%s273_s1] sm:$0xff]  ;;  %v31_v1 = vld [vmem:[%s273_s1 + $0x8] sm:$0xff] }
  0x13   :  { %v32_v2 = vld [vmem:[%s273_s1 + $0x10] sm:$0xff]  ;;  %v178_v3 = vpack.c.bf16 %v31_v1, %v30_v0  ;;  %v33_v4 = vld [vmem:[%s273_s1 + $0x18] sm:$0x7]  ;;  %v28_v5 = vld [vmem:[#allocation2] sm:$0xff]  ;;  %vm219_vm2 = vmmov 1   ;;  %vm127_vm4 = vcmask 261120  }
  0x14   :  { %v182_v6 = vpack.c.bf16 %v33_v4, %v32_v2  ;;  %vm183_vm3 = vmpackc.low %vm48_vm0, %vm219_vm2  ;;  %175 = vmatprep.mubr.msk.f32.mxu0 %vm41_vm1, %v28_v5  ;;  %v29_v7 = vld [vmem:[#allocation2 + $0x8] sm:$0xff]  ;;  %v157_v8 = vld [vmem:[%s274_s2] ss:$0 sm:$0xff]  ;;  %vm148_vm5 = vcmask 1040384   ;;  %vm150_vm6 = vcmask 254976  }
  0x15   :  { %179 = vmatprep.subr.bf16.mxu0 %v178_v3 }
  0x16   :  { %181 = vmatpush3.bf16.msra.mxu0 %v178_v3 }
  0x17   :  { %184 = vmatprep.subr.msk.bf16.mxu0 %vm183_vm3, %v182_v6 }
  0x1a   :  { %187 = vmatpush3.bf16.msk.msra.mxu0 %vm183_vm3, %v182_v6 }
  0x1d   :  { %176 = vmatmul.mubr.msk.f32.vlgmr.msra.gmra.mrb[0].mxu0 %vm41_vm1, %v29_v7 }
  0xf0   :  { %v177_v9 = vpop.f32.mrb[0].mxu0 }
  0xf1   :  { %v124_v10 = vadd.f32 %v177_v9, %v157_v8  ;;  %v118_v11 = vpop.f32.mrb[1].mxu0 }
  0xf2   :  { %v119_v12 = vadd.f32 %v157_v8, %v118_v11 }
  0xf3   :  { %v129_v13 = vsel %vm127_vm4, %v124_v10, 0.0  ;;  %v138_v14 = vmul.f32 %v124_v10, %v124_v10 }
  0xf4   :  { %v128_v15 = vsel %vm127_vm4, %v119_v12, 0.0  ;;  %v137_v16 = vmul.f32 %v119_v12, %v119_v12 }
  0xf5   :  { %v140_v17 = vsel %vm127_vm4, %v138_v14, 0.0  ;;  %v130_v18 = vadd.f32 %v129_v13, %v128_v15 }
  0xf6   :  { %v139_v19 = vsel %vm127_vm4, %v137_v16, 0.0 }
  0xf7   :  { %v131_v20 = vrot.slane %v130_v18, 4  ;;  %v141_v21 = vadd.f32 %v140_v17, %v139_v19 }
  0xf9   :  { %v132_v22 = vadd.f32 %v131_v20, %v130_v18  ;;  %v142_v23 = vrot.slane %v141_v21, 4 }
  0xfb   :  { %v133_v24 = vrot.slane %v132_v22, 2  ;;  %v143_v25 = vadd.f32 %v142_v23, %v141_v21 }
  0xfd   :  { %v134_v26 = vadd.f32 %v133_v24, %v132_v22  ;;  %v144_v27 = vrot.slane %v143_v25, 2 }
  0xff   :  { %v135_v28 = vrot.slane %v134_v26, 1  ;;  %v145_v29 = vadd.f32 %v144_v27, %v143_v25 }
 0x101   :  { %v146_v30 = vrot.slane %v145_v29, 1  ;;  %v136_v31 = vadd.f32 %v135_v28, %v134_v26 }
 0x103   :  { %v147_v32 = vadd.f32 %v146_v30, %v145_v29 }
 0x105   :  { %v149_v33 = vsel %vm148_vm5, %v136_v31, %v147_v32 }
 0x106   :  { %151 = vst.msk [vmem:[%s275_s3] sm:$0x3] %vm150_vm6, %v149_v33 }
 0x107   :  { %156 = vsyncpa [#allocation3], 1 }

// kernel: global_point_parsing_net.5
= control target key start
LH: loop header
LB: loop body
LE: loop exit
PB: predicated region body
PF: predicated region fallthrough
CT: control target
= control target key end

     0   :  { %vm40_vm0 = vcmask 1042432   ;;  %vm33_vm1 = vcmask 220160   ;;  %vm303_vm2 = vmmov 1   ;;  %vm132_vm4 = vcmask 261120   ;;  %s375_s1 = inlined_call_operand.vmem [shape: f32[27,32], index: 1, kind: input, shape index: {}]   ;;  %s376_s0 = inlined_call_operand.vmem [shape: f32[16,27], index: 0, kind: input, shape index: {}]   ;;  %s377_s3 = inlined_call_operand.vmem [shape: f32[32,48], index: 3, kind: input, shape index: {}]   ;;  %s378_s2 = inlined_call_operand.vmem [shape: f32[1,32], index: 2, kind: input, shape index: {}]   ;;  %s379_s4 = inlined_call_operand.vmem [shape: f32[1,48], index: 4, kind: input, shape index: {}]   ;;  %s380_s5 = inlined_call_operand.vmem [shape: f32[1,2,48], index: 5, kind: output, shape index: {}]  }
   0x1   :  { %v22_v0 = vld [vmem:[%s375_s1] sm:$0xff]  ;;  %v23_v1 = vld [vmem:[%s375_s1 + $0x8] sm:$0xff]  ;;  %v24_v2 = vld [vmem:[%s375_s1 + $0x10] sm:$0xff]  ;;  %vm214_vm5 = vcmask 392192   ;;  %vm235_vm6 = vcmask 1040384   ;;  %vm237_vm7 = vcmask 386048  }
   0x2   :  { %v284_v3 = vpack.c.bf16 %v23_v1, %v22_v0  ;;  %v25_v4 = vld [vmem:[%s375_s1 + $0x18] sm:$0x7]  ;;  %v20_v5 = vld [vmem:[%s376_s0] sm:$0xff]  ;;  %vm289_vm3 = vmpackc.low %vm40_vm0, %vm303_vm2 }
   0x3   :  { %v288_v6 = vpack.c.bf16 %v25_v4, %v24_v2  ;;  %270 = vmatprep.mubr.msk.f32.mxu0 %vm33_vm1, %v20_v5  ;;  %v121_v7 = vld [vmem:[%s377_s3] sm:$0xff]  ;;  %v122_v8 = vld [vmem:[%s377_s3 + $0x8] sm:$0xff]  ;;  %v123_v11 = vld [vmem:[%s377_s3 + $0x10] sm:$0xff] }
   0x4   :  { %285 = vmatprep.subr.bf16.mxu0 %v284_v3  ;;  %v294_v9 = vpack.c.bf16 %v122_v8, %v121_v7  ;;  %v21_v10 = vld [vmem:[%s376_s0 + $0x8] sm:$0xff]  ;;  %v124_v12 = vld [vmem:[%s377_s3 + $0x18] sm:$0xff]  ;;  %v243_v14 = vld [vmem:[%s378_s2] ss:$0 sm:$0xff] }
   0x5   :  { %287 = vmatpush3.bf16.msra.mxu0 %v284_v3  ;;  %v298_v13 = vpack.c.bf16 %v124_v12, %v123_v11  ;;  %v247_v21 = vld [vmem:[%s379_s4] ss:$0 sm:$0xff] }
   0x6   :  { %290 = vmatprep.subr.msk.bf16.mxu0 %vm289_vm3, %v288_v6  ;;  %295 = vmatprep.subr.bf16.mxu1 %v294_v9 }
   0x7   :  { %297 = vmatpush3.bf16.msra.mxu1 %v294_v9 }
   0x8   :  { %299 = vmatprep.subr.bf16.mxu1 %v298_v13 }
   0x9   :  { %293 = vmatpush3.bf16.msk.msra.mxu0 %vm289_vm3, %v288_v6 }
   0xb   :  { %301 = vmatpush3.bf16.msra.mxu1 %v298_v13 }
   0xc   :  { %271 = vmatmul.mubr.msk.f32.vlgmr.msra.gmra.mrb[0].mxu0 %vm33_vm1, %v21_v10 }
  0xdf   :  { %v272_v15 = vpop.f32.mrb[0].mxu0 }
  0xe0   :  { %v116_v16 = vadd.f32 %v272_v15, %v243_v14  ;;  %v110_v17 = vpop.f32.mrb[1].mxu0 }
  0xe1   :  { %v111_v18 = vadd.f32 %v243_v14, %v110_v17 }
  0xe2   :  { %v120_v20 = vmax.f32 %v116_v16, 0.0 }
  0xe3   :  { %v119_v19 = vmax.f32 %v111_v18, 0.0 }
  0xe5   :  { %281 = vmatprep.mubr.msk.f32.mxu1 %vm132_vm4, %v119_v19 }
  0xe6   :  { %282 = vmatmul.mubr.msk.f32.vlgmr.msra.gmra.mrb[0].mxu1 %vm132_vm4, %v120_v20 }
 0x1b9   :  { %v283_v22 = vpop.f32.mrb[0].mxu1 }
 0x1ba   :  { %v211_v23 = vadd.f32 %v283_v22, %v247_v21  ;;  %v205_v24 = vpop.f32.mrb[1].mxu1 }
 0x1bb   :  { %v206_v25 = vadd.f32 %v247_v21, %v205_v24 }
 0x1bc   :  { %v216_v26 = vsel %vm214_vm5, %v211_v23, 0.0  ;;  %v225_v27 = vmul.f32 %v211_v23, %v211_v23 }
 0x1bd   :  { %v215_v28 = vsel %vm214_vm5, %v206_v25, 0.0  ;;  %v224_v29 = vmul.f32 %v206_v25, %v206_v25 }
 0x1be   :  { %v227_v30 = vsel %vm214_vm5, %v225_v27, 0.0  ;;  %v217_v31 = vadd.f32 %v216_v26, %v215_v28 }
 0x1bf   :  { %v226_v32 = vsel %vm214_vm5, %v224_v29, 0.0 }
 0x1c0   :  { %v218_v33 = vrot.slane %v217_v31, 4  ;;  %v228_v34 = vadd.f32 %v227_v30, %v226_v32 }
 0x1c2   :  { %v219_v35 = vadd.f32 %v218_v33, %v217_v31  ;;  %v229_v36 = vrot.slane %v228_v34, 4 }
 0x1c4   :  { %v220_v37 = vrot.slane %v219_v35, 2  ;;  %v230_v38 = vadd.f32 %v229_v36, %v228_v34 }
 0x1c6   :  { %v221_v39 = vadd.f32 %v220_v37, %v219_v35  ;;  %v231_v40 = vrot.slane %v230_v38, 2 }
 0x1c8   :  { %v222_v41 = vrot.slane %v221_v39, 1  ;;  %v232_v42 = vadd.f32 %v231_v40, %v230_v38 }
 0x1ca   :  { %v233_v43 = vrot.slane %v232_v42, 1  ;;  %v223_v44 = vadd.f32 %v222_v41, %v221_v39 }
 0x1cc   :  { %v234_v45 = vadd.f32 %v233_v43, %v232_v42 }
 0x1ce   :  { %v236_v46 = vsel %vm235_vm6, %v223_v44, %v234_v45 }
 0x1cf   :  { %238 = vst.msk [vmem:[%s380_s5] sm:$0x3] %vm237_vm7, %v236_v46 }

// kernel: global_point_parsing_net.6
= control target key start
LH: loop header
LB: loop body
LE: loop exit
PB: predicated region body
PF: predicated region fallthrough
CT: control target
= control target key end

     0   :  { %vm46_vm0 = vcmask 1042432   ;;  %vm39_vm1 = vcmask 220160   ;;  %vm444_vm2 = vmmov 1   ;;  %vm138_vm4 = vcmask 261120   ;;  %s547_s1 = inlined_call_operand.vmem [shape: f32[27,32], index: 1, kind: input, shape index: {}]   ;;  %s548_s0 = inlined_call_operand.vmem [shape: f32[16,27], index: 0, kind: input, shape index: {}]   ;;  %s549_s3 = inlined_call_operand.vmem [shape: f32[32,48], index: 3, kind: input, shape index: {}]   ;;  %s550_s5 = inlined_call_operand.vmem [shape: f32[48,64], index: 5, kind: input, shape index: {}]   ;;  %s551_s2 = inlined_call_operand.vmem [shape: f32[1,32], index: 2, kind: input, shape index: {}]   ;;  %s552_s4 = inlined_call_operand.vmem [shape: f32[1,48], index: 4, kind: input, shape index: {}]   ;;  %s553_s6 = inlined_call_operand.vmem [shape: f32[1,64], index: 6, kind: input, shape index: {}]   ;;  %s554_s7 = inlined_call_operand.vmem [shape: f32[1,2,64], index: 7, kind: output, shape index: {}]  }
   0x1   :  { %v28_v0 = vld [vmem:[%s547_s1] sm:$0xff]  ;;  %v29_v1 = vld [vmem:[%s547_s1 + $0x8] sm:$0xff]  ;;  %v30_v2 = vld [vmem:[%s547_s1 + $0x10] sm:$0xff]  ;;  %vm235_vm5 = vcmask 392192   ;;  %vm317_vm6 = vcmask 523264   ;;  %vm338_vm7 = vcmask 1040384  }
   0x2   :  { %v413_v3 = vpack.c.bf16 %v29_v1, %v28_v0  ;;  %v31_v4 = vld [vmem:[%s547_s1 + $0x18] sm:$0x7]  ;;  %v26_v5 = vld [vmem:[%s548_s0] sm:$0xff]  ;;  %vm418_vm3 = vmpackc.low %vm46_vm0, %vm444_vm2  ;;  %vm340_vm8 = vcmask 517120  }
   0x3   :  { %v417_v6 = vpack.c.bf16 %v31_v4, %v30_v2  ;;  %384 = vmatprep.mubr.msk.f32.mxu1 %vm39_vm1, %v26_v5  ;;  %v127_v7 = vld [vmem:[%s549_s3] sm:$0xff]  ;;  %v128_v8 = vld [vmem:[%s549_s3 + $0x8] sm:$0xff]  ;;  %v129_v11 = vld [vmem:[%s549_s3 + $0x10] sm:$0xff] }
   0x4   :  { %414 = vmatprep.subr.bf16.mxu1 %v413_v3  ;;  %v423_v9 = vpack.c.bf16 %v128_v8, %v127_v7  ;;  %v27_v10 = vld [vmem:[%s548_s0 + $0x8] sm:$0xff]  ;;  %v130_v12 = vld [vmem:[%s549_s3 + $0x18] sm:$0xff]  ;;  %v222_v14 = vld [vmem:[%s550_s5] sm:$0xff] }
   0x5   :  { %416 = vmatpush3.bf16.msra.mxu1 %v413_v3  ;;  %v427_v13 = vpack.c.bf16 %v130_v12, %v129_v11  ;;  %v223_v15 = vld [vmem:[%s550_s5 + $0x8] sm:$0xff]  ;;  %v224_v16 = vld [vmem:[%s550_s5 + $0x10] sm:$0xff]  ;;  %v225_v18 = vld [vmem:[%s550_s5 + $0x18] sm:$0xff] }
   0x6   :  { %419 = vmatprep.subr.msk.bf16.mxu1 %vm418_vm3, %v417_v6  ;;  %v431_v17 = vpack.c.bf16 %v223_v15, %v222_v14  ;;  %v435_v19 = vpack.c.bf16 %v225_v18, %v224_v16  ;;  %v346_v20 = vld [vmem:[%s551_s2] ss:$0 sm:$0xff]  ;;  %v227_v28 = vld [vmem:[%s550_s5 + $0x28] sm:$0xff] }
   0x7   :  { %v226_v27 = vld [vmem:[%s550_s5 + $0x20] sm:$0xff] }
   0x8   :  { %432 = vmatprep.subr.bf16.mxu0 %v431_v17  ;;  %v439_v29 = vpack.c.bf16 %v227_v28, %v226_v27  ;;  %v350_v30 = vld [vmem:[%s552_s4] ss:$0 sm:$0xff] }
   0x9   :  { %422 = vmatpush3.bf16.msk.msra.mxu1 %vm418_vm3, %v417_v6  ;;  %434 = vmatpush3.bf16.msra.mxu0 %v431_v17  ;;  %v353_v37 = vld [vmem:[%s553_s6] ss:$0 sm:$0xff] }
   0xa   :  { %424 = vmatprep.subr.bf16.mxu1 %v423_v9  ;;  %436 = vmatprep.subr.bf16.mxu0 %v435_v19 }
   0xc   :  { %385 = vmatmul.mubr.msk.f32.vlgmr.msra.gmra.mrb[0].mxu1 %vm39_vm1, %v27_v10 }
   0xd   :  { %426 = vmatpush3.bf16.msra.mxu1 %v423_v9  ;;  %438 = vmatpush3.bf16.msra.mxu0 %v435_v19 }
   0xe   :  { %428 = vmatprep.subr.bf16.mxu1 %v427_v13  ;;  %440 = vmatprep.subr.bf16.mxu0 %v439_v29 }
  0x11   :  { %430 = vmatpush3.bf16.msra.mxu1 %v427_v13  ;;  %442 = vmatpush3.bf16.msra.mxu0 %v439_v29 }
  0xdf   :  { %v386_v21 = vpop.f32.mrb[0].mxu1 }
  0xe0   :  { %v122_v22 = vadd.f32 %v386_v21, %v346_v20  ;;  %v116_v23 = vpop.f32.mrb[1].mxu1 }
  0xe1   :  { %v117_v24 = vadd.f32 %v346_v20, %v116_v23 }
  0xe2   :  { %v126_v26 = vmax.f32 %v122_v22, 0.0 }
  0xe3   :  { %v125_v25 = vmax.f32 %v117_v24, 0.0 }
  0xe5   :  { %395 = vmatprep.mubr.msk.f32.mxu1 %vm138_vm4, %v125_v25 }
  0xe6   :  { %396 = vmatmul.mubr.msk.f32.vlgmr.msra.gmra.mrb[2].mxu1 %vm138_vm4, %v126_v26 }
 0x1b9   :  { %v397_v31 = vpop.f32.mrb[2].mxu1 }
 0x1ba   :  { %v217_v32 = vadd.f32 %v397_v31, %v350_v30  ;;  %v211_v33 = vpop.f32.mrb[3].mxu1 }
 0x1bb   :  { %v212_v34 = vadd.f32 %v350_v30, %v211_v33 }
 0x1bc   :  { %v221_v36 = vmax.f32 %v217_v32, 0.0 }
 0x1bd   :  { %v220_v35 = vmax.f32 %v212_v34, 0.0 }
 0x1bf   :  { %410 = vmatprep.mubr.msk.f32.mxu0 %vm235_vm5, %v220_v35 }
 0x1c0   :  { %411 = vmatmul.mubr.msk.f32.vlgmr.msra.gmra.mrb[0].mxu0 %vm235_vm5, %v221_v36 }
 0x293   :  { %v412_v38 = vpop.f32.mrb[0].mxu0 }
 0x294   :  { %v314_v39 = vadd.f32 %v412_v38, %v353_v37  ;;  %v308_v40 = vpop.f32.mrb[1].mxu0 }
 0x295   :  { %v309_v41 = vadd.f32 %v353_v37, %v308_v40 }
 0x296   :  { %v319_v42 = vsel %vm317_vm6, %v314_v39, 0.0  ;;  %v328_v43 = vmul.f32 %v314_v39, %v314_v39 }
 0x297   :  { %v318_v44 = vsel %vm317_vm6, %v309_v41, 0.0  ;;  %v327_v45 = vmul.f32 %v309_v41, %v309_v41 }
 0x298   :  { %v330_v46 = vsel %vm317_vm6, %v328_v43, 0.0  ;;  %v320_v47 = vadd.f32 %v319_v42, %v318_v44 }
 0x299   :  { %v329_v48 = vsel %vm317_vm6, %v327_v45, 0.0 }
 0x29a   :  { %v321_v49 = vrot.slane %v320_v47, 4  ;;  %v331_v50 = vadd.f32 %v330_v46, %v329_v48 }
 0x29c   :  { %v322_v51 = vadd.f32 %v321_v49, %v320_v47  ;;  %v332_v52 = vrot.slane %v331_v50, 4 }
 0x29e   :  { %v323_v53 = vrot.slane %v322_v51, 2  ;;  %v333_v54 = vadd.f32 %v332_v52, %v331_v50 }
 0x2a0   :  { %v324_v55 = vadd.f32 %v323_v53, %v322_v51  ;;  %v334_v56 = vrot.slane %v333_v54, 2 }
 0x2a2   :  { %v325_v57 = vrot.slane %v324_v55, 1  ;;  %v335_v58 = vadd.f32 %v334_v56, %v333_v54 }
 0x2a4   :  { %v336_v59 = vrot.slane %v335_v58, 1  ;;  %v326_v60 = vadd.f32 %v325_v57, %v324_v55 }
 0x2a6   :  { %v337_v61 = vadd.f32 %v336_v59, %v335_v58 }
 0x2a8   :  { %v339_v62 = vsel %vm338_vm7, %v326_v60, %v337_v61 }
 0x2a9   :  { %341 = vst.msk [vmem:[%s554_s7] sm:$0x3] %vm340_vm8, %v339_v62 }

// kernel: global_point_parsing_net.7
= control target key start
LH: loop header
LB: loop body
LE: loop exit
PB: predicated region body
PF: predicated region fallthrough
CT: control target
= control target key end

     0   :  { %s1057_s0 = inlined_call_operand.vmem [shape: f32[16,27], index: 0, kind: input, shape index: {}]   ;;  %s1058_s1 = inlined_call_operand.vmem [shape: f32[27,32], index: 1, kind: input, shape index: {}]   ;;  %s1059_s2 = inlined_call_operand.vmem [shape: f32[1,32], index: 2, kind: input, shape index: {}]   ;;  %s1060_s3 = inlined_call_operand.vmem [shape: f32[32,48], index: 3, kind: input, shape index: {}]   ;;  %s1061_s4 = inlined_call_operand.vmem [shape: f32[1,48], index: 4, kind: input, shape index: {}]   ;;  %s1062_s5 = inlined_call_operand.vmem [shape: f32[48,64], index: 5, kind: input, shape index: {}]   ;;  %s1063_s6 = inlined_call_operand.vmem [shape: f32[1,64], index: 6, kind: input, shape index: {}]   ;;  %s1064_s7 = inlined_call_operand.vmem [shape: f32[1,64], index: 7, kind: input, shape index: {}]   ;;  %s1065_s8 = inlined_call_operand.<no memory space> [shape: f32[1,1], index: 8, kind: input, shape index: {}]   ;;  %s1066_s9 = inlined_call_operand.hbm [shape: f32[2,64], index: 9, kind: output, shape index: {0}]   ;;  %s1067_s10 = inlined_call_operand.hbm [shape: f32[2,8], index: 10, kind: output, shape index: {1}]  }
   0x1   :  { %v16_v0 = vstv %s1065_s8 }
   0x2   :  { %17 = vst [vmem:[#allocation2] sm:$0x1] %v16_v0 }
   0x3   :  { %18 = vsyncpa [#allocation4], 0  ;;  %v40_v1 = vld [vmem:[%s1058_s1] sm:$0xff]  ;;  %v41_v2 = vld [vmem:[%s1058_s1 + $0x8] sm:$0xff]  ;;  %vm58_vm0 = vcmask 1042432   ;;  %vm51_vm1 = vcmask 220160  }
   0x4   :  { %v42_v3 = vld [vmem:[%s1058_s1 + $0x10] sm:$0xff]  ;;  %v796_v4 = vpack.c.bf16 %v41_v2, %v40_v1  ;;  %v43_v5 = vld [vmem:[%s1058_s1 + $0x18] sm:$0x7]  ;;  %v38_v6 = vld [vmem:[%s1057_s0] sm:$0xff]  ;;  %vm889_vm2 = vmmov 1  }
   0x5   :  { %v800_v7 = vpack.c.bf16 %v43_v5, %v42_v3  ;;  %vm801_vm3 = vmpackc.low %vm58_vm0, %vm889_vm2  ;;  %747 = vmatprep.mubr.msk.f32.mxu0 %vm51_vm1, %v38_v6  ;;  %v139_v8 = vld [vmem:[%s1060_s3] sm:$0xff]  ;;  %v140_v9 = vld [vmem:[%s1060_s3 + $0x8] sm:$0xff] }
   0x6   :  { %797 = vmatprep.subr.bf16.mxu0 %v796_v4  ;;  %v806_v10 = vpack.c.bf16 %v140_v9, %v139_v8 }
   0x7   :  { %19 = vsyncpa [#allocation6], 0  ;;  %799 = vmatpush3.bf16.msra.mxu0 %v796_v4  ;;  %v39_v11 = vld [vmem:[%s1057_s0 + $0x8] sm:$0xff]  ;;  %v141_v12 = vld [vmem:[%s1060_s3 + $0x10] sm:$0xff]  ;;  %vm150_vm4 = vcmask 261120   ;;  %vm247_vm5 = vcmask 392192   ;;  %v338_v49 = vlaneseq }
   0x8   :  { %802 = vmatprep.subr.msk.bf16.mxu0 %vm801_vm3, %v800_v7  ;;  %807 = vmatprep.subr.bf16.mxu1 %v806_v10  ;;  %v142_v13 = vld [vmem:[%s1060_s3 + $0x18] sm:$0xff]  ;;  %v234_v15 = vld [vmem:[%s1062_s5] sm:$0xff]  ;;  %v235_v16 = vld [vmem:[%s1062_s5 + $0x8] sm:$0xff]  ;;  %v890_v38 = vmov 0.0   ;;  %vm891_vm6 = vmmov 0   ;;  %v892_v40 = vmov 0  }
   0x9   :  { %809 = vmatpush3.bf16.msra.mxu1 %v806_v10  ;;  %v810_v14 = vpack.c.bf16 %v142_v13, %v141_v12  ;;  %v236_v17 = vld [vmem:[%s1062_s5 + $0x10] sm:$0xff]  ;;  %v814_v18 = vpack.c.bf16 %v235_v16, %v234_v15  ;;  %v237_v19 = vld [vmem:[%s1062_s5 + $0x18] sm:$0xff]  ;;  %v695_v21 = vld [vmem:[%s1059_s2] ss:$0 sm:$0xff]  ;;  %832 = vset.pattern.permute.xlu0 %v892_v40  ;;  %vm342_vm7 = vcmask 523264   ;;  %v339_v50 = vshrl.u32 %v338_v49, 7 }
   0xa   :  { %v818_v20 = vpack.c.bf16 %v237_v19, %v236_v17  ;;  %v238_v28 = vld [vmem:[%s1062_s5 + $0x20] sm:$0xff]  ;;  %v239_v29 = vld [vmem:[%s1062_s5 + $0x28] sm:$0xff]  ;;  %vm419_vm8 = vcmask 57344   ;;  %vm431_vm9 = vcmask 64512   ;;  %vm505_vm10 = vcmask 516096  }
   0xb   :  { %805 = vmatpush3.bf16.msk.msra.mxu0 %vm801_vm3, %v800_v7  ;;  %811 = vmatprep.subr.bf16.mxu1 %v810_v14  ;;  %v822_v30 = vpack.c.bf16 %v239_v29, %v238_v28  ;;  %v699_v31 = vld [vmem:[%s1061_s4] ss:$0 sm:$0xff]  ;;  %v340_v51 = vsub.s32 0, %v339_v50 }
   0xc   :  { %815 = vmatprep.subr.bf16.mxu0 %v814_v18  ;;  %v332_v39 = vld [vmem:[#allocation2] sm:$0x1] }
   0xd   :  { %813 = vmatpush3.bf16.msra.mxu1 %v810_v14  ;;  %335 = vperm.xlu0 %832, %v332_v39   ;;  %v702_v41 = vld [vmem:[%s1063_s6] ss:$0 sm:$0xff]  ;;  %s893_s6 = smov [#allocation5]  }
   0xe   :  { %748 = vmatmul.mubr.msk.f32.vlgmr.msra.gmra.mrb[0].mxu0 %vm51_vm1, %v39_v11  ;;  %776 = vmatprep.subr.mxu1 %v890_v38  ;;  %v331_v48 = vld [vmem:[%s1064_s7] sm:$0x1]  ;;  %s683_s7 = sshll.u32 %s893_s6, 4  ;;  %s684_s7 = int_to_ptr.vmem [resolvable:$true] %s683_s7 }
   0xf   :  { %817 = vmatpush3.bf16.msra.mxu0 %v814_v18  ;;  %s841_s27 = scalar_lea.vmem %s684_s7, 32  ;;  %p846_p1 = scmp.lt.s32.totalorder %s684_s7, %s684_s7 }
  0x10   :  { %819 = vmatprep.subr.bf16.mxu0 %v818_v20  ;;  %p842_p0 = scmp.ne.s32.totalorder %s684_s7, %s841_s27  ;;  %p847_p2 = scmp.lt.s32.totalorder %s841_s27, %s841_s27 }
  0x12   :  { %p848_p3 = por %p847_p2, %p846_p1 }
  0x13   :  { %821 = vmatpush3.bf16.msra.mxu0 %v818_v20 }
  0x14   :  { %823 = vmatprep.subr.bf16.mxu0 %v822_v30  ;;  %p849_p4 = pnand %p848_p3, %p842_p0 }
  0x17   :  { %825 = vmatpush3.bf16.msra.mxu0 %v822_v30 }
  0x18   :  { %791 = vmatprep.subr.mxu0 %v890_v38 }
  0x8c   :  { %v336_v52 = vpop.permute.xlu0 %335 }
  0x8d   :  { %v341_v53 = vrot.slane %v336_v52, %v340_v51 }
  0xe1   :  { %v749_v22 = vpop.f32.mrb[0].mxu0 }
  0xe2   :  { %v134_v23 = vadd.f32 %v749_v22, %v695_v21  ;;  %v128_v24 = vpop.f32.mrb[1].mxu0 }
  0xe3   :  { %v129_v25 = vadd.f32 %v695_v21, %v128_v24 }
  0xe4   :  { %v138_v27 = vmax.f32 %v134_v23, 0.0 }
  0xe5   :  { %v137_v26 = vmax.f32 %v129_v25, 0.0 }
  0xe7   :  { %758 = vmatprep.mubr.msk.f32.mxu1 %vm150_vm4, %v137_v26 }
  0xe8   :  { %759 = vmatmul.mubr.msk.f32.vlgmr.msra.gmra.mrb[0].mxu1 %vm150_vm4, %v138_v27 }
  0xe9   :  { %778 = vmatprep.mubr.msk.f32.mxu1 %vm891_vm6, %v890_v38 }
 0x1bb   :  { %v760_v32 = vpop.f32.mrb[0].mxu1 }
 0x1bc   :  { %v229_v33 = vadd.f32 %v760_v32, %v699_v31  ;;  %v223_v34 = vpop.f32.mrb[1].mxu1 }
 0x1bd   :  { %v224_v35 = vadd.f32 %v699_v31, %v223_v34 }
 0x1be   :  { %v233_v37 = vmax.f32 %v229_v33, 0.0 }
 0x1bf   :  { %v232_v36 = vmax.f32 %v224_v35, 0.0 }
 0x1c1   :  { %773 = vmatprep.mubr.msk.f32.mxu0 %vm247_vm5, %v232_v36 }
 0x1c2   :  { %774 = vmatmul.mubr.msk.f32.vlgmr.msra.gmra.mrb[2].mxu0 %vm247_vm5, %v233_v37 }
 0x1c3   :  { %793 = vmatprep.mubr.msk.f32.mxu0 %vm891_vm6, %v890_v38 }
 0x295   :  { %v775_v42 = vpop.f32.mrb[2].mxu0 }
 0x296   :  { %v326_v43 = vadd.f32 %v775_v42, %v702_v41  ;;  %v320_v44 = vpop.f32.mrb[3].mxu0 }
 0x297   :  { %v321_v45 = vadd.f32 %v702_v41, %v320_v44 }
 0x298   :  { %v330_v46 = vmax.f32 %v326_v43, 0.0 }
 0x299   :  { %v329_v47 = vmax.f32 %v321_v45, 0.0 }
 0x29a   :  { %792 = vmatpush3.msra.mxu0 %v330_v46 }
 0x29b   :  { %777 = vmatpush3.xpose.msk.msra.mxu1 %vm342_vm7, %v329_v47 }
 0x29c   :  { %781 = vmatprep.subr.mxu1 %v890_v38 }
 0x29e   :  { %779 = vmatmul.mubr.msk.f32.vlgmr.msra.gmra.mrb[2].mxu1 %vm342_vm7, %v331_v48 }
 0x29f   :  { %782 = vmatpush3.msra.mxu1 %v329_v47  ;;  %783 = vmatprep.mubr.msk.f32.mxu1 %vm891_vm6, %v890_v38 }
 0x2a0   :  { %786 = vmatprep.subr.mxu1 %v890_v38 }
 0x371   :  { %v415_v54 = vpop.f32.mrb[2].mxu1 }
 0x372   :  { %v416_v55 = vadd.f32 %v415_v54, %v341_v53  ;;  %v780_v56 = vpop.f32.mrb[3].mxu1 }
 0x374   :  { %v420_v57 = vsel %vm419_vm8, %v416_v55, -inf }
 0x375   :  { %421 = vmax.xlane.f32.xlu0 %v420_v57 }
 0x402   :  { %v422_v58 = vpop.xlane.xlu0 %421 }
 0x403   :  { %v423_v59 = vsub.f32 %v416_v55, %v422_v58 }
 0x405   :  { %v424_v60 = vmul.f32 1.442695, %v423_v59 }
 0x407   :  { %833 = vpow2.f32 %v424_v60 }
 0x411   :  { %v834_v61 = vpop.eup %833 }
 0x412   :  { %v426_v62 = vsel %vm419_vm8, %v834_v61, 0.0 }
 0x413   :  { %427 = vadd.xlane.f32.xlu1 %v426_v62 }
 0x4a0   :  { %v428_v63 = vpop.xlane.xlu1 %427 }
 0x4a1   :  { %835 = vrcp.f32 %v428_v63 }
 0x4ab   :  { %v836_v0 = vpop.eup %835 }
 0x4ac   :  { %v430_v1 = vmul.f32 %v836_v0, %v834_v61 }
 0x4ae   :  { %507 = vst.msk [vmem:[#allocation5] sm:$0x1] %vm419_vm8, %v430_v1  ;;  %784 = vmatmul.mubr.msk.f32.vlgmr.msra.gmra.mrb[4].mxu1 %vm431_vm9, %v430_v1 }
 0x4af   :  { %787 = vmatpush3.xpose.msk.msra.mxu1 %vm342_vm7, %v330_v46  ;;  %788 = vmatprep.mubr.msk.f32.mxu1 %vm891_vm6, %v890_v38 }
 0x4b2   :  { %789 = vmatmul.mubr.msk.f32.vlgmr.msra.gmra.mrb[6].mxu1 %vm342_vm7, %v331_v48 }
 0x581   :  { %v501_v2 = vpop.f32.mrb[4].mxu1 }
 0x582   :  { %506 = vst.msk [vmem:[#allocation3] sm:$0x1] %vm505_vm10, %v501_v2  ;;  %v785_v3 = vpop.f32.mrb[5].mxu1 }
 0x585   :  { %v577_v4 = vpop.f32.mrb[6].mxu1 }
 0x586   :  { %v578_v5 = vadd.f32 %v577_v4, %v341_v53  ;;  %v790_v6 = vpop.f32.mrb[7].mxu1 }
 0x588   :  { %v581_v7 = vsel %vm419_vm8, %v578_v5, -inf }
 0x589   :  { %582 = vmax.xlane.f32.xlu1 %v581_v7 }
 0x616   :  { %v583_v8 = vpop.xlane.xlu1 %582 }
 0x617   :  { %v584_v9 = vsub.f32 %v578_v5, %v583_v8 }
 0x619   :  { %v585_v10 = vmul.f32 1.442695, %v584_v9 }
 0x61b   :  { %837 = vpow2.f32 %v585_v10 }
 0x625   :  { %v838_v11 = vpop.eup %837 }
 0x626   :  { %v587_v12 = vsel %vm419_vm8, %v838_v11, 0.0 }
 0x627   :  { %588 = vadd.xlane.f32.xlu1 %v587_v12 }
 0x6b4   :  { %v589_v13 = vpop.xlane.xlu1 %588 }
 0x6b5   :  { %839 = vrcp.f32 %v589_v13 }
 0x6bf   :  { %v840_v14 = vpop.eup %839 }
 0x6c0   :  { %v591_v15 = vmul.f32 %v840_v14, %v838_v11 }
 0x6c2   :  { %666 = vst.msk [vmem:[#allocation5 + $0x1] sm:$0x1] %vm419_vm8, %v591_v15  ;;  %794 = vmatmul.mubr.msk.f32.vlgmr.msra.gmra.mrb[4].mxu0 %vm431_vm9, %v591_v15 }
 0x6c3   :  { %852 = shalt.err (!%p849_p4)
}
 0x6c4   :  { %s853_s29 = scalar_lea.hbm %s1067_s10, 32 }
 0x6c5   :  { %p854_p5 = scmp.ne.s32.totalorder %s1067_s10, %s853_s29  ;;  %p857_p6 = scmp.lt.u32.totalorder %s853_s29, %s1067_s10 }
 0x6c7   :  { %p859_p7 = pnand %p857_p6, %p854_p5 }
 0x6c9   :  { %862 = shalt.err (!%p859_p7)
}
 0x6ca   :  { %686 = dma.vmem_to_hbm [thread:$0]  %s684_s7, 32, %s1067_s10, [#allocation6]  }
 0x6cb   :  { %s894_s16 = smov [#allocation3]  }
 0x6cc   :  { %s673_s0 = sshll.u32 %s894_s16, 4  ;;  %s674_s0 = int_to_ptr.vmem [resolvable:$true] %s673_s0 }
 0x6cd   :  { %s863_s17 = scalar_lea.vmem %s674_s0, 32  ;;  %p868_p9 = scmp.lt.s32.totalorder %s674_s0, %s674_s0 }
 0x6ce   :  { %p864_p8 = scmp.ne.s32.totalorder %s674_s0, %s863_s17  ;;  %p869_p10 = scmp.lt.s32.totalorder %s863_s17, %s863_s17 }
 0x6d0   :  { %p870_p11 = por %p869_p10, %p868_p9 }
 0x6d2   :  { %p871_p12 = pnand %p870_p11, %p864_p8 }
 0x795   :  { %v661_v16 = vpop.f32.mrb[4].mxu0 }
 0x796   :  { %665 = vst.msk [vmem:[#allocation3 + $0x1] sm:$0x1] %vm505_vm10, %v661_v16  ;;  %v795_v17 = vpop.f32.mrb[5].mxu0 }
 0x797   :  { %874 = shalt.err (!%p871_p12)
}
 0x798   :  { %s875_s3 = scalar_lea.hbm %s1066_s9, 32 }
 0x799   :  { %p876_p13 = scmp.ne.s32.totalorder %s1066_s9, %s875_s3  ;;  %p879_p0 = scmp.lt.u32.totalorder %s875_s3, %s1066_s9 }
 0x79b   :  { %p881_p1 = pnand %p879_p0, %p876_p13 }
 0x79d   :  { %884 = shalt.err (!%p881_p1)
}
 0x79e   :  { %676 = dma.vmem_to_hbm [thread:$0]  %s674_s0, 32, %s1066_s9, [#allocation4]  }
 0x79f   :  { %885 = dma.done.wait [#allocation4], 32  }
 0x7a0   :  { %886 = vsyncadd [#allocation4], 4294967264 }
 0x7a1   :  { %887 = dma.done.wait [#allocation6], 32  }
 0x7a2   :  { %888 = vsyncadd [#allocation6], 4294967264 }
 0x7a3   :  { %693 = vsyncpa [#allocation4], 1 }
 0x7a4   :  { %694 = vsyncpa [#allocation6], 1 }

</bundles_post_ra>
